<compile_context>
chip_gen: v7x
topology: tpu7x:2x2x1
jax: 0.10.0
libtpu: 0.0.40
codegen_flags: <defaults>
</compile_context>

<pallas_src>
import functools

import jax
import jax.numpy as jnp
from jax import lax
from jax.experimental import pallas as pl
from jax.experimental.pallas import tpu as pltpu


def decom_block_kernel(x_ref, w_ref, o_ref, acc_ref, *, TH, W, ksize):
    """One (image, row-tile) per grid step.

    x_ref  : (H+2p, W+2p, Cin)        zero-padded NHWC input (whole image, reused across row tiles)
    w_ref  : (k*k, out_channels, Cin) folded dense conv weight, one (O, Cin) slab per tap
    o_ref  : (out_channels, TH*W)     lane-dense NCHW-flat output block
    acc_ref: (out_channels, TH*W)     f32 VMEM accumulator
    """
    row0 = pl.program_id(1) * TH
    acc_ref[...] = jnp.zeros_like(acc_ref)
    # Static k*k tap loop (k is tiny & static): static slice offsets for kx, one MXU
    # push per tap; live range is bounded by the VMEM scratch accumulator.
    for ky in range(ksize):
        for kx in range(ksize):
            patch = x_ref[pl.ds(row0 + ky, TH), pl.ds(kx, W), :]      # (TH, W, Cin)
            patch2d = patch.reshape(TH * W, Cin := patch.shape[-1])   # cheap sublane merge
            # (O, Cin) x (TH*W, Cin)^T  ->  (O, TH*W)   ("NT" matmul, K = Cin)
            acc_ref[...] += lax.dot_general(
                w_ref[ky * ksize + kx], patch2d,
                (((1,), (1,)), ((), ())),
                preferred_element_type=jnp.float32)
    o_ref[...] = acc_ref[...].astype(o_ref.dtype)


def _pick_row_tile(H, W, out_channels):
    """Pick a row tile TH dividing H such that the flat output width TH*W is lane-dense
    (multiple of 128) and the per-step output block is modest; prefer >=2 tiles so the
    second grid axis has work (v7x megacore / pipelining). Fall back to full height."""
    budget = 4 << 20  # bytes per output block (Pallas double-buffers it)
    for th in range(H // 2, 0, -1):
        if H % th == 0 and (th * W) % 128 == 0 and th * W * out_channels * 4 <= budget:
            return th
    return H


def decom_block_forward(x_nchw, filter_bank, w2, basis_size, n_basis):
    """filter_bank: (n_basis, basis_size, k, k)  (PyTorch OIHW)
       w2         : (out_channels, group*n_basis, 1, 1) (PyTorch OIHW)"""
    N, Cin, H, W = x_nchw.shape
    ksize = filter_bank.shape[-1]
    assert Cin % basis_size == 0, "in_channels must be divisible by basis_size"
    group = Cin // basis_size
    out_channels = w2.shape[0]
    pad = ksize // 2

    # ---- fold the shared filter bank and the 1x1 conv into one dense kxk weight ----
    w2m = w2.reshape(out_channels, group, n_basis)                    # (O, G, B)
    w_fold = jnp.einsum('ogb,bsyx->ogsyx', w2m, filter_bank)          # (O, G, bs, k, k)
    w_fold = w_fold.reshape(out_channels, Cin, ksize, ksize)          # (O, Cin, k, k)
    w_k = jnp.transpose(w_fold, (2, 3, 0, 1)).reshape(
        ksize * ksize, out_channels, Cin)                             # (k*k, O, Cin)

    # ---- NHWC + zero padding for the shifted-window conv (input glue) ----
    x_nhwc = jnp.transpose(x_nchw, (0, 2, 3, 1))
    xp = jnp.pad(x_nhwc, ((0, 0), (pad, pad), (pad, pad), (0, 0)))
    Hp, Wp = H + 2 * pad, W + 2 * pad

    TH = _pick_row_tile(H, W, out_channels)
    THW = TH * W
    n_h = H // TH

    kernel = functools.partial(decom_block_kernel, TH=TH, W=W, ksize=ksize)

    out_flat = pl.pallas_call(
        kernel,
        out_shape=jax.ShapeDtypeStruct((N, out_channels, H * W), x_nchw.dtype),
        grid_spec=pltpu.PrefetchScalarGridSpec(
            num_scalar_prefetch=0,
            grid=(N, n_h),
            in_specs=[
                # whole padded image; index_map ignores h -> stays resident across row tiles
                pl.BlockSpec((None, Hp, Wp, Cin), lambda n, h: (n, 0, 0, 0)),
                # folded weight, resident across the whole grid
                pl.BlockSpec((ksize * ksize, out_channels, Cin),
                             lambda n, h: (0, 0, 0)),
            ],
            out_specs=pl.BlockSpec((None, out_channels, THW),
                                   lambda n, h: (n, 0, h)),
            scratch_shapes=[pltpu.VMEM((out_channels, THW), jnp.float32)],
        ),
        compiler_params=pltpu.CompilerParams(
            dimension_semantics=("parallel", "parallel")),
    )(xp, w_k)

    # (N, O, H*W) -> (N, O, H, W): contiguous reshape, no transpose needed.
    return out_flat.reshape(N, out_channels, H, W)


def reference(x_nchw, filter_bank, w2, basis_size):
    """Pure-JAX reference mirroring the PyTorch forward (two-stage)."""
    Cin = x_nchw.shape[1]
    k = filter_bank.shape[-1]
    group = Cin // basis_size
    outs = []
    for g in range(group):
        xi = x_nchw[:, g * basis_size:(g + 1) * basis_size]
        yi = lax.conv_general_dilated(
            xi, filter_bank, window_strides=(1, 1),
            padding=[(k // 2, k // 2)] * 2,
            dimension_numbers=('NCHW', 'OIHW', 'NCHW'))
        outs.append(yi)
    mid = jnp.concatenate(outs, axis=1)
    return lax.conv_general_dilated(
        mid, w2, window_strides=(1, 1), padding='VALID',
        dimension_numbers=('NCHW', 'OIHW', 'NCHW'))


if __name__ == "__main__":
    key = jax.random.PRNGKey(0)
    k1, k2, k3 = jax.random.split(key, 3)

    # small shapes consistent with DecomBlock
    N, Cin, H, W = 2, 8, 16, 16
    basis_size, n_basis, out_channels, ksize = 4, 6, 8, 3
    group = Cin // basis_size

    x = jax.random.normal(k1, (N, Cin, H, W), dtype=jnp.float32)
    filter_bank = 0.1 * jax.random.normal(
        k2, (n_basis, basis_size, ksize, ksize), dtype=jnp.float32)
    w2 = 0.1 * jax.random.normal(
        k3, (out_channels, group * n_basis, 1, 1), dtype=jnp.float32)

    out = decom_block_forward(x, filter_bank, w2, basis_size, n_basis)
    out = jax.block_until_ready(out)

    ref = reference(x, filter_bank, w2, basis_size)
    assert out.shape == ref.shape == (N, out_channels, H, W)
    assert jnp.allclose(out, ref, atol=1e-4, rtol=1e-4), "mismatch vs reference"
    print("KERNEL_OK")
</pallas_src>

<mosaic_0001>
module attributes {stable_mosaic.version = 11 : i64} {
  func.func @decom_block_kernel(%arg0: i32, %arg1: i32, %arg2: memref<1x18x18x8xf32, #tpu.memory_space<vmem>>, %arg3: memref<9x8x8xf32, #tpu.memory_space<vmem>>, %arg4: memref<1x8x128xf32, #tpu.memory_space<vmem>>, %arg5: memref<8x128xf32, #tpu.memory_space<vmem>>) attributes {dimension_semantics = [#tpu.dimension_semantics<parallel>, #tpu.dimension_semantics<parallel>], iteration_bounds = array<i64: 2, 2>, scalar_prefetch = 0 : i64, scratch_operands = 1 : i64, tpu.core_type = #tpu.core_type<tc>, window_params = [{transform_indices = @transform_0, window_bounds = array<i64: 1, 18, 18, 8>}, {pipeline_mode = #tpu.pipeline_mode<synchronous>, transform_indices = @transform_1, window_bounds = array<i64: 9, 8, 8>}, {transform_indices = @transform_2, window_bounds = array<i64: 1, 8, 128>}]} {
    %c8_i32 = arith.constant 8 : i32
    %0 = arith.muli %arg1, %c8_i32 : i32
    %cst = arith.constant 0.000000e+00 : f32
    %1 = vector.broadcast %cst : f32 to vector<8x128xf32>
    %c0 = arith.constant 0 : index
    %c0_0 = arith.constant 0 : index
    %2 = vector.load %arg5[%c0, %c0_0] : memref<8x128xf32, #tpu.memory_space<vmem>>, vector<8x128xf32>
    tpu.vector_store %arg5[%c0, %c0_0], %1 {strides = array<i32>} : memref<8x128xf32, #tpu.memory_space<vmem>>, vector<8x128xf32>,
    %c0_i32 = arith.constant 0 : i32
    %3 = arith.addi %0, %c0_i32 : i32
    %c0_1 = arith.constant 0 : index
    %4 = arith.index_cast %3 : i32 to index
    %c0_2 = arith.constant 0 : index
    %c0_3 = arith.constant 0 : index
    %5 = vector.load %arg2[%c0_1, %4, %c0_2, %c0_3] : memref<1x18x18x8xf32, #tpu.memory_space<vmem>>, vector<1x8x16x8xf32>
    %6 = vector.shape_cast %5 : vector<1x8x16x8xf32> to vector<8x16x8xf32>
    %7 = vector.shape_cast %6 : vector<8x16x8xf32> to vector<128x8xf32>
    %c0_4 = arith.constant 0 : index
    %c0_5 = arith.constant 0 : index
    %8 = vector.load %arg5[%c0_4, %c0_5] : memref<8x128xf32, #tpu.memory_space<vmem>>, vector<8x128xf32>
    %c0_6 = arith.constant 0 : index
    %c0_7 = arith.constant 0 : index
    %c0_8 = arith.constant 0 : index
    %9 = vector.load %arg3[%c0_6, %c0_7, %c0_8] : memref<9x8x8xf32, #tpu.memory_space<vmem>>, vector<1x8x8xf32>
    %10 = vector.shape_cast %9 : vector<1x8x8xf32> to vector<8x8xf32>
    %cst_9 = arith.constant dense<0.000000e+00> : vector<8x128xf32>
    %11 = tpu.matmul %10, %7, %cst_9 {dimension_numbers = #tpu.dot_dimension_numbers<[1], [1], [0], [0], [0, 0, 1, 0], [], []>} : vector<8x8xf32>, vector<128x8xf32>, vector<8x128xf32> -> vector<8x128xf32>
    %12 = arith.addf %8, %11 : vector<8x128xf32>
    %c0_10 = arith.constant 0 : index
    %c0_11 = arith.constant 0 : index
    %13 = vector.load %arg5[%c0_10, %c0_11] : memref<8x128xf32, #tpu.memory_space<vmem>>, vector<8x128xf32>
    tpu.vector_store %arg5[%c0_10, %c0_11], %12 {strides = array<i32>} : memref<8x128xf32, #tpu.memory_space<vmem>>, vector<8x128xf32>,
    %c0_i32_12 = arith.constant 0 : i32
    %14 = arith.addi %0, %c0_i32_12 : i32
    %c0_13 = arith.constant 0 : index
    %15 = arith.index_cast %14 : i32 to index
    %c1 = arith.constant 1 : index
    %c0_14 = arith.constant 0 : index
    %16 = vector.load %arg2[%c0_13, %15, %c1, %c0_14] : memref<1x18x18x8xf32, #tpu.memory_space<vmem>>, vector<1x8x16x8xf32>
    %17 = vector.shape_cast %16 : vector<1x8x16x8xf32> to vector<8x16x8xf32>
    %18 = vector.shape_cast %17 : vector<8x16x8xf32> to vector<128x8xf32>
    %c0_15 = arith.constant 0 : index
    %c0_16 = arith.constant 0 : index
    %19 = vector.load %arg5[%c0_15, %c0_16] : memref<8x128xf32, #tpu.memory_space<vmem>>, vector<8x128xf32>
    %c1_17 = arith.constant 1 : index
    %c0_18 = arith.constant 0 : index
    %c0_19 = arith.constant 0 : index
    %20 = vector.load %arg3[%c1_17, %c0_18, %c0_19] : memref<9x8x8xf32, #tpu.memory_space<vmem>>, vector<1x8x8xf32>
    %21 = vector.shape_cast %20 : vector<1x8x8xf32> to vector<8x8xf32>
    %cst_20 = arith.constant dense<0.000000e+00> : vector<8x128xf32>
    %22 = tpu.matmul %21, %18, %cst_20 {dimension_numbers = #tpu.dot_dimension_numbers<[1], [1], [0], [0], [0, 0, 1, 0], [], []>} : vector<8x8xf32>, vector<128x8xf32>, vector<8x128xf32> -> vector<8x128xf32>
    %23 = arith.addf %19, %22 : vector<8x128xf32>
    %c0_21 = arith.constant 0 : index
    %c0_22 = arith.constant 0 : index
    %24 = vector.load %arg5[%c0_21, %c0_22] : memref<8x128xf32, #tpu.memory_space<vmem>>, vector<8x128xf32>
    tpu.vector_store %arg5[%c0_21, %c0_22], %23 {strides = array<i32>} : memref<8x128xf32, #tpu.memory_space<vmem>>, vector<8x128xf32>,
    %c0_i32_23 = arith.constant 0 : i32
    %25 = arith.addi %0, %c0_i32_23 : i32
    %c0_24 = arith.constant 0 : index
    %26 = arith.index_cast %25 : i32 to index
    %c2 = arith.constant 2 : index
    %c0_25 = arith.constant 0 : index
    %27 = vector.load %arg2[%c0_24, %26, %c2, %c0_25] : memref<1x18x18x8xf32, #tpu.memory_space<vmem>>, vector<1x8x16x8xf32>
    %28 = vector.shape_cast %27 : vector<1x8x16x8xf32> to vector<8x16x8xf32>
    %29 = vector.shape_cast %28 : vector<8x16x8xf32> to vector<128x8xf32>
    %c0_26 = arith.constant 0 : index
    %c0_27 = arith.constant 0 : index
    %30 = vector.load %arg5[%c0_26, %c0_27] : memref<8x128xf32, #tpu.memory_space<vmem>>, vector<8x128xf32>
    %c2_28 = arith.constant 2 : index
    %c0_29 = arith.constant 0 : index
    %c0_30 = arith.constant 0 : index
    %31 = vector.load %arg3[%c2_28, %c0_29, %c0_30] : memref<9x8x8xf32, #tpu.memory_space<vmem>>, vector<1x8x8xf32>
    %32 = vector.shape_cast %31 : vector<1x8x8xf32> to vector<8x8xf32>
    %cst_31 = arith.constant dense<0.000000e+00> : vector<8x128xf32>
    %33 = tpu.matmul %32, %29, %cst_31 {dimension_numbers = #tpu.dot_dimension_numbers<[1], [1], [0], [0], [0, 0, 1, 0], [], []>} : vector<8x8xf32>, vector<128x8xf32>, vector<8x128xf32> -> vector<8x128xf32>
    %34 = arith.addf %30, %33 : vector<8x128xf32>
    %c0_32 = arith.constant 0 : index
    %c0_33 = arith.constant 0 : index
    %35 = vector.load %arg5[%c0_32, %c0_33] : memref<8x128xf32, #tpu.memory_space<vmem>>, vector<8x128xf32>
    tpu.vector_store %arg5[%c0_32, %c0_33], %34 {strides = array<i32>} : memref<8x128xf32, #tpu.memory_space<vmem>>, vector<8x128xf32>,
    %c1_i32 = arith.constant 1 : i32
    %36 = arith.addi %0, %c1_i32 : i32
    %c0_34 = arith.constant 0 : index
    %37 = arith.index_cast %36 : i32 to index
    %c0_35 = arith.constant 0 : index
    %c0_36 = arith.constant 0 : index
    %38 = vector.load %arg2[%c0_34, %37, %c0_35, %c0_36] : memref<1x18x18x8xf32, #tpu.memory_space<vmem>>, vector<1x8x16x8xf32>
    %39 = vector.shape_cast %38 : vector<1x8x16x8xf32> to vector<8x16x8xf32>
    %40 = vector.shape_cast %39 : vector<8x16x8xf32> to vector<128x8xf32>
    %c0_37 = arith.constant 0 : index
    %c0_38 = arith.constant 0 : index
    %41 = vector.load %arg5[%c0_37, %c0_38] : memref<8x128xf32, #tpu.memory_space<vmem>>, vector<8x128xf32>
    %c3 = arith.constant 3 : index
    %c0_39 = arith.constant 0 : index
    %c0_40 = arith.constant 0 : index
    %42 = vector.load %arg3[%c3, %c0_39, %c0_40] : memref<9x8x8xf32, #tpu.memory_space<vmem>>, vector<1x8x8xf32>
    %43 = vector.shape_cast %42 : vector<1x8x8xf32> to vector<8x8xf32>
    %cst_41 = arith.constant dense<0.000000e+00> : vector<8x128xf32>
    %44 = tpu.matmul %43, %40, %cst_41 {dimension_numbers = #tpu.dot_dimension_numbers<[1], [1], [0], [0], [0, 0, 1, 0], [], []>} : vector<8x8xf32>, vector<128x8xf32>, vector<8x128xf32> -> vector<8x128xf32>
    %45 = arith.addf %41, %44 : vector<8x128xf32>
    %c0_42 = arith.constant 0 : index
    %c0_43 = arith.constant 0 : index
    %46 = vector.load %arg5[%c0_42, %c0_43] : memref<8x128xf32, #tpu.memory_space<vmem>>, vector<8x128xf32>
    tpu.vector_store %arg5[%c0_42, %c0_43], %45 {strides = array<i32>} : memref<8x128xf32, #tpu.memory_space<vmem>>, vector<8x128xf32>,
    %c1_i32_44 = arith.constant 1 : i32
    %47 = arith.addi %0, %c1_i32_44 : i32
    %c0_45 = arith.constant 0 : index
    %48 = arith.index_cast %47 : i32 to index
    %c1_46 = arith.constant 1 : index
    %c0_47 = arith.constant 0 : index
    %49 = vector.load %arg2[%c0_45, %48, %c1_46, %c0_47] : memref<1x18x18x8xf32, #tpu.memory_space<vmem>>, vector<1x8x16x8xf32>
    %50 = vector.shape_cast %49 : vector<1x8x16x8xf32> to vector<8x16x8xf32>
    %51 = vector.shape_cast %50 : vector<8x16x8xf32> to vector<128x8xf32>
    %c0_48 = arith.constant 0 : index
    %c0_49 = arith.constant 0 : index
    %52 = vector.load %arg5[%c0_48, %c0_49] : memref<8x128xf32, #tpu.memory_space<vmem>>, vector<8x128xf32>
    %c4 = arith.constant 4 : index
    %c0_50 = arith.constant 0 : index
    %c0_51 = arith.constant 0 : index
    %53 = vector.load %arg3[%c4, %c0_50, %c0_51] : memref<9x8x8xf32, #tpu.memory_space<vmem>>, vector<1x8x8xf32>
    %54 = vector.shape_cast %53 : vector<1x8x8xf32> to vector<8x8xf32>
    %cst_52 = arith.constant dense<0.000000e+00> : vector<8x128xf32>
    %55 = tpu.matmul %54, %51, %cst_52 {dimension_numbers = #tpu.dot_dimension_numbers<[1], [1], [0], [0], [0, 0, 1, 0], [], []>} : vector<8x8xf32>, vector<128x8xf32>, vector<8x128xf32> -> vector<8x128xf32>
    %56 = arith.addf %52, %55 : vector<8x128xf32>
    %c0_53 = arith.constant 0 : index
    %c0_54 = arith.constant 0 : index
    %57 = vector.load %arg5[%c0_53, %c0_54] : memref<8x128xf32, #tpu.memory_space<vmem>>, vector<8x128xf32>
    tpu.vector_store %arg5[%c0_53, %c0_54], %56 {strides = array<i32>} : memref<8x128xf32, #tpu.memory_space<vmem>>, vector<8x128xf32>,
    %c1_i32_55 = arith.constant 1 : i32
    %58 = arith.addi %0, %c1_i32_55 : i32
    %c0_56 = arith.constant 0 : index
    %59 = arith.index_cast %58 : i32 to index
    %c2_57 = arith.constant 2 : index
    %c0_58 = arith.constant 0 : index
    %60 = vector.load %arg2[%c0_56, %59, %c2_57, %c0_58] : memref<1x18x18x8xf32, #tpu.memory_space<vmem>>, vector<1x8x16x8xf32>
    %61 = vector.shape_cast %60 : vector<1x8x16x8xf32> to vector<8x16x8xf32>
    %62 = vector.shape_cast %61 : vector<8x16x8xf32> to vector<128x8xf32>
    %c0_59 = arith.constant 0 : index
    %c0_60 = arith.constant 0 : index
    %63 = vector.load %arg5[%c0_59, %c0_60] : memref<8x128xf32, #tpu.memory_space<vmem>>, vector<8x128xf32>
    %c5 = arith.constant 5 : index
    %c0_61 = arith.constant 0 : index
    %c0_62 = arith.constant 0 : index
    %64 = vector.load %arg3[%c5, %c0_61, %c0_62] : memref<9x8x8xf32, #tpu.memory_space<vmem>>, vector<1x8x8xf32>
    %65 = vector.shape_cast %64 : vector<1x8x8xf32> to vector<8x8xf32>
    %cst_63 = arith.constant dense<0.000000e+00> : vector<8x128xf32>
    %66 = tpu.matmul %65, %62, %cst_63 {dimension_numbers = #tpu.dot_dimension_numbers<[1], [1], [0], [0], [0, 0, 1, 0], [], []>} : vector<8x8xf32>, vector<128x8xf32>, vector<8x128xf32> -> vector<8x128xf32>
    %67 = arith.addf %63, %66 : vector<8x128xf32>
    %c0_64 = arith.constant 0 : index
    %c0_65 = arith.constant 0 : index
    %68 = vector.load %arg5[%c0_64, %c0_65] : memref<8x128xf32, #tpu.memory_space<vmem>>, vector<8x128xf32>
    tpu.vector_store %arg5[%c0_64, %c0_65], %67 {strides = array<i32>} : memref<8x128xf32, #tpu.memory_space<vmem>>, vector<8x128xf32>,
    %c2_i32 = arith.constant 2 : i32
    %69 = arith.addi %0, %c2_i32 : i32
    %c0_66 = arith.constant 0 : index
    %70 = arith.index_cast %69 : i32 to index
    %c0_67 = arith.constant 0 : index
    %c0_68 = arith.constant 0 : index
    %71 = vector.load %arg2[%c0_66, %70, %c0_67, %c0_68] : memref<1x18x18x8xf32, #tpu.memory_space<vmem>>, vector<1x8x16x8xf32>
    %72 = vector.shape_cast %71 : vector<1x8x16x8xf32> to vector<8x16x8xf32>
    %73 = vector.shape_cast %72 : vector<8x16x8xf32> to vector<128x8xf32>
    %c0_69 = arith.constant 0 : index
    %c0_70 = arith.constant 0 : index
    %74 = vector.load %arg5[%c0_69, %c0_70] : memref<8x128xf32, #tpu.memory_space<vmem>>, vector<8x128xf32>
    %c6 = arith.constant 6 : index
    %c0_71 = arith.constant 0 : index
    %c0_72 = arith.constant 0 : index
    %75 = vector.load %arg3[%c6, %c0_71, %c0_72] : memref<9x8x8xf32, #tpu.memory_space<vmem>>, vector<1x8x8xf32>
    %76 = vector.shape_cast %75 : vector<1x8x8xf32> to vector<8x8xf32>
    %cst_73 = arith.constant dense<0.000000e+00> : vector<8x128xf32>
    %77 = tpu.matmul %76, %73, %cst_73 {dimension_numbers = #tpu.dot_dimension_numbers<[1], [1], [0], [0], [0, 0, 1, 0], [], []>} : vector<8x8xf32>, vector<128x8xf32>, vector<8x128xf32> -> vector<8x128xf32>
    %78 = arith.addf %74, %77 : vector<8x128xf32>
    %c0_74 = arith.constant 0 : index
    %c0_75 = arith.constant 0 : index
    %79 = vector.load %arg5[%c0_74, %c0_75] : memref<8x128xf32, #tpu.memory_space<vmem>>, vector<8x128xf32>
    tpu.vector_store %arg5[%c0_74, %c0_75], %78 {strides = array<i32>} : memref<8x128xf32, #tpu.memory_space<vmem>>, vector<8x128xf32>,
    %c2_i32_76 = arith.constant 2 : i32
    %80 = arith.addi %0, %c2_i32_76 : i32
    %c0_77 = arith.constant 0 : index
    %81 = arith.index_cast %80 : i32 to index
    %c1_78 = arith.constant 1 : index
    %c0_79 = arith.constant 0 : index
    %82 = vector.load %arg2[%c0_77, %81, %c1_78, %c0_79] : memref<1x18x18x8xf32, #tpu.memory_space<vmem>>, vector<1x8x16x8xf32>
    %83 = vector.shape_cast %82 : vector<1x8x16x8xf32> to vector<8x16x8xf32>
    %84 = vector.shape_cast %83 : vector<8x16x8xf32> to vector<128x8xf32>
    %c0_80 = arith.constant 0 : index
    %c0_81 = arith.constant 0 : index
    %85 = vector.load %arg5[%c0_80, %c0_81] : memref<8x128xf32, #tpu.memory_space<vmem>>, vector<8x128xf32>
    %c7 = arith.constant 7 : index
    %c0_82 = arith.constant 0 : index
    %c0_83 = arith.constant 0 : index
    %86 = vector.load %arg3[%c7, %c0_82, %c0_83] : memref<9x8x8xf32, #tpu.memory_space<vmem>>, vector<1x8x8xf32>
    %87 = vector.shape_cast %86 : vector<1x8x8xf32> to vector<8x8xf32>
    %cst_84 = arith.constant dense<0.000000e+00> : vector<8x128xf32>
    %88 = tpu.matmul %87, %84, %cst_84 {dimension_numbers = #tpu.dot_dimension_numbers<[1], [1], [0], [0], [0, 0, 1, 0], [], []>} : vector<8x8xf32>, vector<128x8xf32>, vector<8x128xf32> -> vector<8x128xf32>
    %89 = arith.addf %85, %88 : vector<8x128xf32>
    %c0_85 = arith.constant 0 : index
    %c0_86 = arith.constant 0 : index
    %90 = vector.load %arg5[%c0_85, %c0_86] : memref<8x128xf32, #tpu.memory_space<vmem>>, vector<8x128xf32>
    tpu.vector_store %arg5[%c0_85, %c0_86], %89 {strides = array<i32>} : memref<8x128xf32, #tpu.memory_space<vmem>>, vector<8x128xf32>,
    %c2_i32_87 = arith.constant 2 : i32
    %91 = arith.addi %0, %c2_i32_87 : i32
    %c0_88 = arith.constant 0 : index
    %92 = arith.index_cast %91 : i32 to index
    %c2_89 = arith.constant 2 : index
    %c0_90 = arith.constant 0 : index
    %93 = vector.load %arg2[%c0_88, %92, %c2_89, %c0_90] : memref<1x18x18x8xf32, #tpu.memory_space<vmem>>, vector<1x8x16x8xf32>
    %94 = vector.shape_cast %93 : vector<1x8x16x8xf32> to vector<8x16x8xf32>
    %95 = vector.shape_cast %94 : vector<8x16x8xf32> to vector<128x8xf32>
    %c0_91 = arith.constant 0 : index
    %c0_92 = arith.constant 0 : index
    %96 = vector.load %arg5[%c0_91, %c0_92] : memref<8x128xf32, #tpu.memory_space<vmem>>, vector<8x128xf32>
    %c8 = arith.constant 8 : index
    %c0_93 = arith.constant 0 : index
    %c0_94 = arith.constant 0 : index
    %97 = vector.load %arg3[%c8, %c0_93, %c0_94] : memref<9x8x8xf32, #tpu.memory_space<vmem>>, vector<1x8x8xf32>
    %98 = vector.shape_cast %97 : vector<1x8x8xf32> to vector<8x8xf32>
    %cst_95 = arith.constant dense<0.000000e+00> : vector<8x128xf32>
    %99 = tpu.matmul %98, %95, %cst_95 {dimension_numbers = #tpu.dot_dimension_numbers<[1], [1], [0], [0], [0, 0, 1, 0], [], []>} : vector<8x8xf32>, vector<128x8xf32>, vector<8x128xf32> -> vector<8x128xf32>
    %100 = arith.addf %96, %99 : vector<8x128xf32>
    %c0_96 = arith.constant 0 : index
    %c0_97 = arith.constant 0 : index
    %101 = vector.load %arg5[%c0_96, %c0_97] : memref<8x128xf32, #tpu.memory_space<vmem>>, vector<8x128xf32>
    tpu.vector_store %arg5[%c0_96, %c0_97], %100 {strides = array<i32>} : memref<8x128xf32, #tpu.memory_space<vmem>>, vector<8x128xf32>,
    %c0_98 = arith.constant 0 : index
    %c0_99 = arith.constant 0 : index
    %102 = vector.load %arg5[%c0_98, %c0_99] : memref<8x128xf32, #tpu.memory_space<vmem>>, vector<8x128xf32>
    %c0_100 = arith.constant 0 : index
    %c0_101 = arith.constant 0 : index
    %c0_102 = arith.constant 0 : index
    %103 = vector.load %arg4[%c0_100, %c0_101, %c0_102] : memref<1x8x128xf32, #tpu.memory_space<vmem>>, vector<1x8x128xf32>
    %104 = vector.shape_cast %103 : vector<1x8x128xf32> to vector<8x128xf32>
    %105 = vector.shape_cast %102 : vector<8x128xf32> to vector<1x8x128xf32>
    tpu.vector_store %arg4[%c0_100, %c0_101, %c0_102], %105 {strides = array<i32>} : memref<1x8x128xf32, #tpu.memory_space<vmem>>, vector<1x8x128xf32>,
    return
  }
  func.func @transform_0(%arg0: i32, %arg1: i32) -> (i32, i32, i32, i32) {
    %c0_i32 = arith.constant 0 : i32
    %c0_i32_0 = arith.constant 0 : i32
    %c0_i32_1 = arith.constant 0 : i32
    %c0_i32_2 = arith.constant 0 : i32
    return %arg0, %c0_i32, %c0_i32_0, %c0_i32_1 : i32, i32, i32, i32
  }
  func.func @transform_1(%arg0: i32, %arg1: i32) -> (i32, i32, i32) {
    %c0_i32 = arith.constant 0 : i32
    %c0_i32_0 = arith.constant 0 : i32
    %c0_i32_1 = arith.constant 0 : i32
    %c0_i32_2 = arith.constant 0 : i32
    return %c0_i32, %c0_i32_0, %c0_i32_1 : i32, i32, i32
  }
  func.func @transform_2(%arg0: i32, %arg1: i32) -> (i32, i32, i32) {
    %c0_i32 = arith.constant 0 : i32
    %c0_i32_0 = arith.constant 0 : i32
    return %arg0, %c0_i32, %arg1 : i32, i32, i32
  }
}

</mosaic_0001>

<bundles_post_ra>
// kernel: tpu_custom_call.1
= control target key start
LH: loop header
LB: loop body
LE: loop exit
PB: predicated region body
PF: predicated region fallthrough
CT: control target
= control target key end

     0   :  { %7 = vsyncpa [#allocation4], 0  ;;  %s3364_s0 = inlined_call_operand.vmem [shape: f32[2,18,18,8], index: 0, kind: input, shape index: {}]   ;;  %s3365_s1 = inlined_call_operand.vmem [shape: f32[9,8,8], index: 1, kind: input, shape index: {}]   ;;  %s3366_s2 = inlined_call_operand.hbm [shape: f32[2,8,256], index: 2, kind: output, shape index: {}]  }
   0x1   :  { %9 = vsyncpa [#allocation4 + $0x1], 0  ;;  %s2780_s9 = smov 0   ;;  %s2782_s10 = smov 0  }
   0x2   :  { %s2784_s11 = smov 0   ;;  %s2786_s12 = smov 0  }
   0x3   :  { %s2788_s13 = smov 0   ;;  %s2790_s14 = smov 0  }
   0x4   :  { %s2792_s15 = smov 0   ;;  %s2794_s16 = smov 0  }
   0x5 LB: > { %s1544_s17 = sadd.s32 4294967295, %s2759_s16   ;;  %s1545_s18 = sadd.s32 4294967294, %s2759_s16   ;;  %s2759_s16 = sphi %s2794_s16, %s15_s16   ;;  %s2755_s15 = sphi %s2792_s15, %s3377_s15   ;;  %s2751_s14 = sphi %s2790_s14, %s3376_s14   ;;  %s2747_s13 = sphi %s2788_s13, %s3375_s13   ;;  %s2743_s12 = sphi %s2786_s12, %s3374_s12   ;;  %s2739_s11 = sphi %s2784_s11, %s3373_s11   ;;  %s2735_s10 = sphi %s2782_s10, %s3372_s10   ;;  %s2731_s9 = sphi %s2780_s9, %s3371_s9  }
   0x6   : > { %s24_s19 = sadd.s32 1, %s2751_s14  ;;  %s27_s20 = sadd.s32 1, %s2755_s15 }
   0x7   : > { %p25_p0 = scmp.ge.s32.totalorder %s24_s19, 2  ;;  %p93_p1 = scmp.ne.s32.totalorder %s2739_s11, %s2735_s10 }
   0x8   : > { %p94_p2 = scmp.eq.s32.totalorder %s1544_s17, 3  ;;  %p99_p5 = scmp.ne.s32.totalorder %s2735_s10, %s2731_s9 }
   0x9   : > { %s3379_s19 = smov (%p25_p0, %s24_s19), 0  ;;  %s3381_s20 = smov (!%p25_p0, %s27_s20), %s2755_s15 }
   0xa   : > { %s79_s21 = ssub.s32 %s2751_s14, %s3379_s19  ;;  %p2831_p3 = por %p94_p2, %p93_p1 }
   0xb   : > { %p29_p4 = scmp.ge.s32.totalorder %s3381_s20, 2  ;;  %p100_p6 = scmp.eq.s32.totalorder %s1545_s18, 3 }
   0xc   : > { %p1548_p7 = scmp.ge.s32.totalorder %s2759_s16, 1  ;;  %p129_p9 = scmp.lt.s32.totalorder %s2759_s16, 5 }
   0xd   : > { %s3383_s20 = smov (%p29_p4, %s3381_s20), 0  ;;  %p2840_p8 = por %p100_p6, %p99_p5 }
   0xe   : > { %s78_s24 = ssub.s32 %s2755_s15, %s3383_s20  ;;  %s83_s25 = sadd.s32 1, %s2739_s11 }
   0xf   : > { %s80_s26 = sor.u32 %s79_s21, %s78_s24  ;;  %p130_p10 = pnand %p1548_p7, %p129_p9 }
  0x10   : > { %p81_p11 = scmp.eq.s32.totalorder %s80_s26, 0  ;;  %p151_p12 = scmp.lt.s32.totalorder (!%p130_p10), %s2747_s13, 1  ;;  %v2761_v0 = vmov (!%p130_p10), 0.0|0.0   ;;  %vm2762_vm0 = vmmov (!%p130_p10), 0   ;;  %v2763_v1 = vmov (!%p130_p10), 0.0   ;;  %vm178_vm1 = vcmask (!%p130_p10), 64512  }
  0x11   : > { %133 = sbr.rel (%p130_p10) target bundleno = 581 (0x245), region = 28  ;;  %2287 = vmatprep.subr.bf16.mxu1 (!%p130_p10), %v2761_v0  ;;  %2415 = vmatprep.subr.bf16.mxu0 (!%p130_p10), %v2761_v0  ;;  %vm2867_vm2 = vmpackc.low (!%p130_p10), %vm178_vm1, %vm178_vm1  ;;  %v177_v55 = vld [vmem:[%s3365_s1] sm:$0xff] (!%p130_p10)  ;;  %s148_s21 = sand.u32 (!%p130_p10), 1, %s2735_s10  }
  0x12   : > { %s2849_s27 = scalar_select %p81_p11, %s2739_s11, %s83_s25  }
  0x13   : > { %2004 = vmatprep.mubr.msk.f32.mxu1 (!%p130_p10), %vm2762_vm0, %v2763_v1  ;;  %2144 = vmatprep.mubr.msk.f32.mxu0 (!%p130_p10), %vm2762_vm0, %v2763_v1  ;;  %s1552_s29 = smul.u32 (!%p130_p10), 192, %s2743_s12  ;;  %v1658_v57 = vld [vmem:[%s3365_s1 + $0x20] sm:$0xff] (!%p130_p10)  ;;  %s1549_s24 = sshll.u32 (!%p130_p10), %s148_s21, 3 }
  0x14   : > { %s1815_s25 = sshll.u32 (!%p130_p10), %s2747_s13, 1 }
  0x15   : > { %s1458_s26 = sadd.s32 (!%p130_p10), %s2743_s12, %s1815_s25  ;;  %s2764_s12 = smov (!%p130_p10), [#allocation3]  }
  0x16   : > { %s2669_s7 = sshll.u32 (!%p130_p10), %s2764_s12, 4  ;;  %s2670_s7 = int_to_ptr.vmem [resolvable:$false] %s2669_s7 }
  0x17   : > { %s2671_s8 = scalar_lea.vmem (!%p130_p10), %s2670_s7, 256 }
  0x18   : > { %s152_s28 = scalar_select %p151_p12, %s2747_s13, 1 }
  0x1a   : > { %s2590_s30 = smul.u32 432, %s152_s28  ;;  %s1816_s28 = sshll.u32 %s1458_s26, 7 }
  0x1b   : > { %s3311_s4 = scalar_lea.hbm %s3366_s2, %s1816_s28 }
  0x1c   : > { %s155_s5 = scalar_lea.vmem %s3364_s0, %s2590_s30 }
  0x1d   : > { %s2863_s6 = scalar_lea.vmem %s155_s5, %s1552_s29  ;;  %s150_s29 = scalar_lea.vmem [#allocation3], %s1549_s24 }
  0x1e   : > { %v160_v3 = vld [vmem:[%s2863_s6] sm:$0xff]  ;;  %v161_v4 = vld [vmem:[%s2863_s6 + $0x8] sm:$0xff]  ;;  %v162_v9 = vld [vmem:[%s2863_s6 + $0x18] sm:$0xff]  ;;  %s1447_s5 = scalar_lea.sflag [#allocation4], %s148_s21 }
  0x1f   : > { %v1642_v5 = vld [vmem:[%s2863_s6 + $0x19] sm:$0xff]  ;;  %v2288_v6 = vpack.c.bf16 %v161_v4, %v160_v3  ;;  %v1643_v7 = vld [vmem:[%s2863_s6 + $0x21] sm:$0xff]  ;;  %v1644_v11 = vld [vmem:[%s2863_s6 + $0x31] sm:$0xff] }
  0x20   : > { %v2875_v8 = vpack.c.bf16 %v1643_v7, %v1642_v5  ;;  %v163_v10 = vld [vmem:[%s2863_s6 + $0x20] sm:$0xff]  ;;  %v164_v15 = vld [vmem:[%s2863_s6 + $0x30] sm:$0xff]  ;;  %v165_v16 = vld [vmem:[%s2863_s6 + $0x38] sm:$0xff] }
  0x21   : > { %2290 = vmatpush3.bf16.xpose.msk.msra.mxu1 %vm2867_vm2, %v2288_v6  ;;  %v1645_v12 = vld [vmem:[%s2863_s6 + $0x39] sm:$0xff]  ;;  %v2888_v13 = vpack.c.bf16 %v163_v10, %v162_v9  ;;  %v1646_v17 = vld [vmem:[%s2863_s6 + $0x49] sm:$0xff]  ;;  %v1647_v18 = vld [vmem:[%s2863_s6 + $0x51] sm:$0xff]  ;;  %v2904_v19 = vpack.c.bf16 %v165_v16, %v164_v15 }
  0x22   : > { %2418 = vmatpush3.bf16.xpose.msk.msra.mxu0 %vm2867_vm2, %v2875_v8  ;;  %2291 = vmatprep.subr.bf16.mxu1 %v2761_v0  ;;  %v2890_v14 = vpack.c.bf16 %v1645_v12, %v1644_v11  ;;  %v2906_v20 = vpack.c.bf16 %v1647_v18, %v1646_v17  ;;  %v166_v21 = vld [vmem:[%s2863_s6 + $0x48] sm:$0xff]  ;;  %v167_v22 = vld [vmem:[%s2863_s6 + $0x50] sm:$0xff]  ;;  %v168_v27 = vld [vmem:[%s2863_s6 + $0x60] sm:$0xff] }
  0x23   : > { %2419 = vmatprep.subr.bf16.mxu0 %v2761_v0  ;;  %v1648_v23 = vld [vmem:[%s2863_s6 + $0x61] sm:$0xff]  ;;  %v1649_v24 = vld [vmem:[%s2863_s6 + $0x69] sm:$0xff]  ;;  %v2920_v25 = vpack.c.bf16 %v167_v22, %v166_v21  ;;  %v1650_v29 = vld [vmem:[%s2863_s6 + $0x79] sm:$0xff] }
  0x24   : > { %v2922_v26 = vpack.c.bf16 %v1649_v24, %v1648_v23  ;;  %v169_v28 = vld [vmem:[%s2863_s6 + $0x68] sm:$0xff]  ;;  %v170_v33 = vld [vmem:[%s2863_s6 + $0x78] sm:$0xff]  ;;  %v171_v34 = vld [vmem:[%s2863_s6 + $0x80] sm:$0xff] }
  0x25   : > { %v1651_v30 = vld [vmem:[%s2863_s6 + $0x81] sm:$0xff]  ;;  %v2936_v31 = vpack.c.bf16 %v169_v28, %v168_v27  ;;  %v1652_v35 = vld [vmem:[%s2863_s6 + $0x91] sm:$0xff]  ;;  %v1653_v36 = vld [vmem:[%s2863_s6 + $0x99] sm:$0xff]  ;;  %v2952_v37 = vpack.c.bf16 %v171_v34, %v170_v33 }
  0x26   : > { %v2938_v32 = vpack.c.bf16 %v1651_v30, %v1650_v29  ;;  %v2954_v38 = vpack.c.bf16 %v1653_v36, %v1652_v35  ;;  %v172_v39 = vld [vmem:[%s2863_s6 + $0x90] sm:$0xff]  ;;  %v173_v40 = vld [vmem:[%s2863_s6 + $0x98] sm:$0xff]  ;;  %v174_v45 = vld [vmem:[%s2863_s6 + $0xa8] sm:$0xff] }
  0x27   : > { %v1654_v41 = vld [vmem:[%s2863_s6 + $0xa9] sm:$0xff]  ;;  %v1655_v42 = vld [vmem:[%s2863_s6 + $0xb1] sm:$0xff]  ;;  %v2968_v43 = vpack.c.bf16 %v173_v40, %v172_v39  ;;  %v1656_v47 = vld [vmem:[%s2863_s6 + $0xc1] sm:$0xff] }
  0x28   : > { %v2970_v44 = vpack.c.bf16 %v1655_v42, %v1654_v41  ;;  %v175_v46 = vld [vmem:[%s2863_s6 + $0xb0] sm:$0xff]  ;;  %v302_v51 = vld [vmem:[%s2863_s6 + $0x1] sm:$0xff]  ;;  %v1726_v35 = vld [vmem:[%s2863_s6 + $0xd8] sm:$0xff] }
  0x29   : > { %2294 = vmatpush3.bf16.xpose.msk.msra.mxu1 %vm2867_vm2, %v2888_v13  ;;  %v1657_v48 = vld [vmem:[%s2863_s6 + $0xc9] sm:$0xff]  ;;  %v2984_v49 = vpack.c.bf16 %v175_v46, %v174_v45  ;;  %v1676_v53 = vld [vmem:[%s2863_s6 + $0x1a] sm:$0xff]  ;;  %v1678_v59 = vld [vmem:[%s2863_s6 + $0x32] sm:$0xff] }
  0x2a   : > { %2422 = vmatpush3.bf16.xpose.msk.msra.mxu0 %vm2867_vm2, %v2890_v14  ;;  %2295 = vmatprep.subr.bf16.mxu1 %v2761_v0  ;;  %v2986_v50 = vpack.c.bf16 %v1657_v48, %v1656_v47  ;;  %v303_v52 = vld [vmem:[%s2863_s6 + $0x9] sm:$0xff]  ;;  %v1679_v60 = vld [vmem:[%s2863_s6 + $0x3a] sm:$0xff]  ;;  %v1681_v63 = vld [vmem:[%s2863_s6 + $0x52] sm:$0xff] }
  0x2b   : > { %2423 = vmatprep.subr.bf16.mxu0 %v2761_v0  ;;  %v1677_v54 = vld [vmem:[%s2863_s6 + $0x22] sm:$0xff]  ;;  %v2320_v56 = vpack.c.bf16 %v303_v52, %v302_v51  ;;  %v3023_v61 = vpack.c.bf16 %v1679_v60, %v1678_v59  ;;  %v1680_v62 = vld [vmem:[%s2863_s6 + $0x4a] sm:$0xff]  ;;  %v1684_v7 = vld [vmem:[%s2863_s6 + $0x7a] sm:$0xff] }
  0x2c   : > { %v3006_v58 = vpack.c.bf16 %v1677_v54, %v1676_v53  ;;  %v3035_v3 = vpack.c.bf16 %v1681_v63, %v1680_v62  ;;  %v1682_v4 = vld [vmem:[%s2863_s6 + $0x62] sm:$0xff]  ;;  %v1683_v5 = vld [vmem:[%s2863_s6 + $0x6a] sm:$0xff]  ;;  %v1686_v10 = vld [vmem:[%s2863_s6 + $0x92] sm:$0xff] }
  0x2d   : > { %v3047_v6 = vpack.c.bf16 %v1683_v5, %v1682_v4  ;;  %v1687_v11 = vld [vmem:[%s2863_s6 + $0x9a] sm:$0xff]  ;;  %v1688_v15 = vld [vmem:[%s2863_s6 + $0xaa] sm:$0xff]  ;;  %v1689_v16 = vld [vmem:[%s2863_s6 + $0xb2] sm:$0xff] }
  0x2e   : > { %v3071_v12 = vpack.c.bf16 %v1687_v11, %v1686_v10  ;;  %v3083_v17 = vpack.c.bf16 %v1689_v16, %v1688_v15  ;;  %v1690_v18 = vld [vmem:[%s2863_s6 + $0xc2] sm:$0xff]  ;;  %v1691_v21 = vld [vmem:[%s2863_s6 + $0xca] sm:$0xff] }
  0x2f   : > { %v3095_v22 = vpack.c.bf16 %v1691_v21, %v1690_v18  ;;  %v444_v23 = vld [vmem:[%s2863_s6 + $0x2] sm:$0xff]  ;;  %v445_v24 = vld [vmem:[%s2863_s6 + $0xa] sm:$0xff] }
  0x30   : > { %v1570_v27 = vld [vmem:[%s3365_s1 + $0x8] sm:$0xff]  ;;  %v2352_v28 = vpack.c.bf16 %v445_v24, %v444_v23  ;;  %v1724_v30 = vld [vmem:[%s2863_s6 + $0xc0] sm:$0xff]  ;;  %v1588_v40 = vld [vmem:[%s3365_s1 + $0x10] sm:$0xff] }
  0x31   : > { %2298 = vmatpush3.bf16.xpose.msk.msra.mxu1 %vm2867_vm2, %v2904_v19  ;;  %v1692_v29 = vld [vmem:[%s3365_s1 + $0x28] sm:$0xff]  ;;  %v1727_v36 = vld [vmem:[%s2863_s6 + $0xe0] sm:$0xff]  ;;  %v1728_v41 = vld [vmem:[%s3365_s1 + $0x30] sm:$0xff] }
  0x32   : > { %2426 = vmatpush3.bf16.xpose.msk.msra.mxu0 %vm2867_vm2, %v2906_v20  ;;  %2299 = vmatprep.subr.bf16.mxu1 %v2761_v0  ;;  %v1725_v33 = vld [vmem:[%s2863_s6 + $0xc8] sm:$0xff]  ;;  %v2508_v39 = vpack.c.bf16 %v1727_v36, %v1726_v35 }
  0x33   : > { %2427 = vmatprep.subr.bf16.mxu0 %v2761_v0  ;;  %v2504_v34 = vpack.c.bf16 %v1725_v33, %v1724_v30 }
  0x39   : > { %2302 = vmatpush3.bf16.xpose.msk.msra.mxu1 %vm2867_vm2, %v2920_v25 }
  0x3a   : > { %2430 = vmatpush3.bf16.xpose.msk.msra.mxu0 %vm2867_vm2, %v2922_v26  ;;  %2303 = vmatprep.subr.bf16.mxu1 %v2761_v0 }
  0x3b   : > { %2431 = vmatprep.subr.bf16.mxu0 %v2761_v0 }
  0x41   : > { %2306 = vmatpush3.bf16.xpose.msk.msra.mxu1 %vm2867_vm2, %v2936_v31 }
  0x42   : > { %2434 = vmatpush3.bf16.xpose.msk.msra.mxu0 %vm2867_vm2, %v2938_v32  ;;  %2307 = vmatprep.subr.bf16.mxu1 %v2761_v0 }
  0x43   : > { %2435 = vmatprep.subr.bf16.mxu0 %v2761_v0 }
  0x49   : > { %2310 = vmatpush3.bf16.xpose.msk.msra.mxu1 %vm2867_vm2, %v2952_v37 }
  0x4a   : > { %2438 = vmatpush3.bf16.xpose.msk.msra.mxu0 %vm2867_vm2, %v2954_v38  ;;  %2311 = vmatprep.subr.bf16.mxu1 %v2761_v0 }
  0x4b   : > { %2439 = vmatprep.subr.bf16.mxu0 %v2761_v0 }
  0x51   : > { %2314 = vmatpush3.bf16.xpose.msk.msra.mxu1 %vm2867_vm2, %v2968_v43 }
  0x52   : > { %2442 = vmatpush3.bf16.xpose.msk.msra.mxu0 %vm2867_vm2, %v2970_v44  ;;  %2315 = vmatprep.subr.bf16.mxu1 %v2761_v0 }
  0x53   : > { %2443 = vmatprep.subr.bf16.mxu0 %v2761_v0 }
  0x59   : > { %2318 = vmatpush3.bf16.xpose.msk.msra.mxu1 %vm2867_vm2, %v2984_v49 }
  0x5a   : > { %2446 = vmatpush3.bf16.xpose.msk.msra.mxu0 %vm2867_vm2, %v2986_v50  ;;  %2319 = vmatprep.subr.bf16.mxu1 %v2761_v0 }
  0x5b   : > { %2447 = vmatprep.subr.bf16.mxu0 %v2761_v0 }
  0x60   : > { %2005 = vmatmul.mubr.msk.f32.vlgmr.msra.gmra.mrb[0].mxu1 %vm178_vm1, %v177_v55 }
  0x61   : > { %2322 = vmatpush3.bf16.xpose.msk.msra.mxu1 %vm2867_vm2, %v2320_v56  ;;  %2145 = vmatmul.mubr.msk.f32.vlgmr.msra.gmra.mrb[0].mxu0 %vm178_vm1, %v1658_v57 }
  0x62   : > { %2450 = vmatpush3.bf16.xpose.msk.msra.mxu0 %vm2867_vm2, %v3006_v58  ;;  %2323 = vmatprep.subr.bf16.mxu1 %v2761_v0 }
  0x63   : > { %2451 = vmatprep.subr.bf16.mxu0 %v2761_v0  ;;  %2039 = vmatprep.mubr.msk.f32.mxu1 %vm2762_vm0, %v2763_v1 }
  0x64   : > { %2179 = vmatprep.mubr.msk.f32.mxu0 %vm2762_vm0, %v2763_v1 }
  0x69   : > { %2326 = vmatpush3.bf16.xpose.msk.msra.mxu1 %vm2867_vm2, %v2875_v8  ;;  %v1685_v8 = vld [vmem:[%s2863_s6 + $0x82] sm:$0xff] }
  0x6a   : > { %2454 = vmatpush3.bf16.xpose.msk.msra.mxu0 %vm2867_vm2, %v3023_v61  ;;  %2327 = vmatprep.subr.bf16.mxu1 %v2761_v0  ;;  %v3059_v9 = vpack.c.bf16 %v1685_v8, %v1684_v7 }
  0x6b   : > { %2455 = vmatprep.subr.bf16.mxu0 %v2761_v0 }
  0x71   : > { %2330 = vmatpush3.bf16.xpose.msk.msra.mxu1 %vm2867_vm2, %v2890_v14 }
  0x72   : > { %2458 = vmatpush3.bf16.xpose.msk.msra.mxu0 %vm2867_vm2, %v3035_v3  ;;  %2331 = vmatprep.subr.bf16.mxu1 %v2761_v0 }
  0x73   : > { %2459 = vmatprep.subr.bf16.mxu0 %v2761_v0 }
  0x79   : > { %2334 = vmatpush3.bf16.xpose.msk.msra.mxu1 %vm2867_vm2, %v2906_v20 }
  0x7a   : > { %2462 = vmatpush3.bf16.xpose.msk.msra.mxu0 %vm2867_vm2, %v3047_v6  ;;  %2335 = vmatprep.subr.bf16.mxu1 %v2761_v0 }
  0x7b   : > { %2463 = vmatprep.subr.bf16.mxu0 %v2761_v0 }
  0x81   : > { %2338 = vmatpush3.bf16.xpose.msk.msra.mxu1 %vm2867_vm2, %v2922_v26 }
  0x82   : > { %2466 = vmatpush3.bf16.xpose.msk.msra.mxu0 %vm2867_vm2, %v3059_v9  ;;  %2339 = vmatprep.subr.bf16.mxu1 %v2761_v0 }
  0x83   : > { %2467 = vmatprep.subr.bf16.mxu0 %v2761_v0 }
  0x89   : > { %2342 = vmatpush3.bf16.xpose.msk.msra.mxu1 %vm2867_vm2, %v2938_v32 }
  0x8a   : > { %2470 = vmatpush3.bf16.xpose.msk.msra.mxu0 %vm2867_vm2, %v3071_v12  ;;  %2343 = vmatprep.subr.bf16.mxu1 %v2761_v0 }
  0x8b   : > { %2471 = vmatprep.subr.bf16.mxu0 %v2761_v0 }
  0x91   : > { %2346 = vmatpush3.bf16.xpose.msk.msra.mxu1 %vm2867_vm2, %v2954_v38 }
  0x92   : > { %2474 = vmatpush3.bf16.xpose.msk.msra.mxu0 %vm2867_vm2, %v3083_v17  ;;  %2347 = vmatprep.subr.bf16.mxu1 %v2761_v0 }
  0x93   : > { %2475 = vmatprep.subr.bf16.mxu0 %v2761_v0 }
  0x99   : > { %2350 = vmatpush3.bf16.xpose.msk.msra.mxu1 %vm2867_vm2, %v2970_v44 }
  0x9a   : > { %2478 = vmatpush3.bf16.xpose.msk.msra.mxu0 %vm2867_vm2, %v3095_v22  ;;  %2351 = vmatprep.subr.bf16.mxu1 %v2761_v0 }
  0x9b   : > { %2479 = vmatprep.subr.bf16.mxu0 %v2761_v0 }
  0xa0   : > { %2040 = vmatmul.mubr.msk.f32.vlgmr.msra.gmra.mrb[0].mxu1 %vm178_vm1, %v1570_v27 }
  0xa1   : > { %2354 = vmatpush3.bf16.xpose.msk.msra.mxu1 %vm2867_vm2, %v2352_v28  ;;  %2180 = vmatmul.mubr.msk.f32.vlgmr.msra.gmra.mrb[0].mxu0 %vm178_vm1, %v1692_v29 }
  0xa2   : > { %2482 = vmatpush3.bf16.xpose.msk.msra.mxu0 %vm2867_vm2, %v2904_v19  ;;  %2355 = vmatprep.subr.bf16.mxu1 %v2761_v0 }
  0xa3   : > { %2483 = vmatprep.subr.bf16.mxu0 %v2761_v0  ;;  %2074 = vmatprep.mubr.msk.f32.mxu1 %vm2762_vm0, %v2763_v1 }
  0xa4   : > { %2214 = vmatprep.mubr.msk.f32.mxu0 %vm2762_vm0, %v2763_v1 }
  0xa9   : > { %2358 = vmatpush3.bf16.xpose.msk.msra.mxu1 %vm2867_vm2, %v3006_v58 }
  0xaa   : > { %2486 = vmatpush3.bf16.xpose.msk.msra.mxu0 %vm2867_vm2, %v2920_v25  ;;  %2359 = vmatprep.subr.bf16.mxu1 %v2761_v0 }
  0xab   : > { %2487 = vmatprep.subr.bf16.mxu0 %v2761_v0 }
  0xb1   : > { %2362 = vmatpush3.bf16.xpose.msk.msra.mxu1 %vm2867_vm2, %v3023_v61 }
  0xb2   : > { %2490 = vmatpush3.bf16.xpose.msk.msra.mxu0 %vm2867_vm2, %v2936_v31  ;;  %2363 = vmatprep.subr.bf16.mxu1 %v2761_v0 }
  0xb3   : > { %2491 = vmatprep.subr.bf16.mxu0 %v2761_v0 }
  0xb9   : > { %2366 = vmatpush3.bf16.xpose.msk.msra.mxu1 %vm2867_vm2, %v3035_v3 }
  0xba   : > { %2494 = vmatpush3.bf16.xpose.msk.msra.mxu0 %vm2867_vm2, %v2952_v37  ;;  %2367 = vmatprep.subr.bf16.mxu1 %v2761_v0 }
  0xbb   : > { %2495 = vmatprep.subr.bf16.mxu0 %v2761_v0 }
  0xc1   : > { %2370 = vmatpush3.bf16.xpose.msk.msra.mxu1 %vm2867_vm2, %v3047_v6 }
  0xc2   : > { %2498 = vmatpush3.bf16.xpose.msk.msra.mxu0 %vm2867_vm2, %v2968_v43  ;;  %2371 = vmatprep.subr.bf16.mxu1 %v2761_v0 }
  0xc3   : > { %2499 = vmatprep.subr.bf16.mxu0 %v2761_v0 }
  0xc9   : > { %2374 = vmatpush3.bf16.xpose.msk.msra.mxu1 %vm2867_vm2, %v3059_v9 }
  0xca   : > { %2502 = vmatpush3.bf16.xpose.msk.msra.mxu0 %vm2867_vm2, %v2984_v49  ;;  %2375 = vmatprep.subr.bf16.mxu1 %v2761_v0 }
  0xcb   : > { %2503 = vmatprep.subr.bf16.mxu0 %v2761_v0 }
  0xd1   : > { %2378 = vmatpush3.bf16.xpose.msk.msra.mxu1 %vm2867_vm2, %v3071_v12 }
  0xd2   : > { %2506 = vmatpush3.bf16.xpose.msk.msra.mxu0 %vm2867_vm2, %v2504_v34  ;;  %2379 = vmatprep.subr.bf16.mxu1 %v2761_v0 }
  0xd3   : > { %2507 = vmatprep.subr.bf16.mxu0 %v2761_v0 }
  0xd9   : > { %2382 = vmatpush3.bf16.xpose.msk.msra.mxu1 %vm2867_vm2, %v3083_v17 }
  0xda   : > { %2510 = vmatpush3.bf16.xpose.msk.msra.mxu0 %vm2867_vm2, %v2508_v39  ;;  %2383 = vmatprep.subr.bf16.mxu1 %v2761_v0 }
  0xdb   : > { %2511 = vmatprep.subr.bf16.mxu0 %v2761_v0 }
  0xe0   : > { %2075 = vmatmul.mubr.msk.f32.vlgmr.msra.gmra.mrb[0].mxu1 %vm178_vm1, %v1588_v40 }
  0xe1   : > { %2386 = vmatpush3.bf16.xpose.msk.msra.mxu1 %vm2867_vm2, %v2888_v13  ;;  %2215 = vmatmul.mubr.msk.f32.vlgmr.msra.gmra.mrb[0].mxu0 %vm178_vm1, %v1728_v41  ;;  %v1760_v13 = vld [vmem:[%s2863_s6 + $0xd9] sm:$0xff] }
  0xe2   : > { %2514 = vmatpush3.bf16.xpose.msk.msra.mxu0 %vm2867_vm2, %v2890_v14  ;;  %2387 = vmatprep.subr.bf16.mxu1 %v2761_v0  ;;  %v1761_v14 = vld [vmem:[%s2863_s6 + $0xe1] sm:$0xff] }
  0xe3   : > { %2515 = vmatprep.subr.bf16.mxu0 %v2761_v0  ;;  %2109 = vmatprep.mubr.msk.f32.mxu1 %vm2762_vm0, %v2763_v1 }
  0xe4   : > { %2249 = vmatprep.mubr.msk.f32.mxu0 %vm2762_vm0, %v2763_v1 }
  0xe9   : > { %2390 = vmatpush3.bf16.xpose.msk.msra.mxu1 %vm2867_vm2, %v2904_v19  ;;  %v2540_v19 = vpack.c.bf16 %v1761_v14, %v1760_v13 }
  0xea   : > { %2518 = vmatpush3.bf16.xpose.msk.msra.mxu0 %vm2867_vm2, %v2906_v20  ;;  %2391 = vmatprep.subr.bf16.mxu1 %v2761_v0  ;;  %v1624_v20 = vld [vmem:[%s3365_s1 + $0x18] sm:$0xff] }
  0xeb   : > { %2519 = vmatprep.subr.bf16.mxu0 %v2761_v0 }
  0xf1   : > { %2394 = vmatpush3.bf16.xpose.msk.msra.mxu1 %vm2867_vm2, %v2920_v25  ;;  %v1762_v25 = vld [vmem:[%s3365_s1 + $0x38] sm:$0xff] }
  0xf2   : > { %2522 = vmatpush3.bf16.xpose.msk.msra.mxu0 %vm2867_vm2, %v2922_v26  ;;  %2395 = vmatprep.subr.bf16.mxu1 %v2761_v0  ;;  %v1795_v26 = vld [vmem:[%s2863_s6 + $0xe2] sm:$0xff] }
  0xf3   : > { %2523 = vmatprep.subr.bf16.mxu0 %v2761_v0 }
  0xf9   : > { %2398 = vmatpush3.bf16.xpose.msk.msra.mxu1 %vm2867_vm2, %v2936_v31 }
  0xfa   : > { %2526 = vmatpush3.bf16.xpose.msk.msra.mxu0 %vm2867_vm2, %v2938_v32  ;;  %2399 = vmatprep.subr.bf16.mxu1 %v2761_v0  ;;  %v1796_v32 = vld [vmem:[%s3365_s1 + $0x40] sm:$0xff] }
  0xfb   : > { %2527 = vmatprep.subr.bf16.mxu0 %v2761_v0 }
 0x101   : > { %2402 = vmatpush3.bf16.xpose.msk.msra.mxu1 %vm2867_vm2, %v2952_v37 }
 0x102   : > { %2530 = vmatpush3.bf16.xpose.msk.msra.mxu0 %vm2867_vm2, %v2954_v38  ;;  %2403 = vmatprep.subr.bf16.mxu1 %v2761_v0 }
 0x103   : > { %2531 = vmatprep.subr.bf16.mxu0 %v2761_v0 }
 0x109   : > { %2406 = vmatpush3.bf16.xpose.msk.msra.mxu1 %vm2867_vm2, %v2968_v43 }
 0x10a   : > { %2534 = vmatpush3.bf16.xpose.msk.msra.mxu0 %vm2867_vm2, %v2970_v44  ;;  %2407 = vmatprep.subr.bf16.mxu1 %v2761_v0 }
 0x10b   : > { %2535 = vmatprep.subr.bf16.mxu0 %v2761_v0 }
 0x111   : > { %2410 = vmatpush3.bf16.xpose.msk.msra.mxu1 %vm2867_vm2, %v2984_v49 }
 0x112   : > { %2538 = vmatpush3.bf16.xpose.msk.msra.mxu0 %vm2867_vm2, %v2986_v50  ;;  %2411 = vmatprep.subr.bf16.mxu1 %v2761_v0 }
 0x113   : > { %2539 = vmatprep.subr.bf16.mxu0 %v2761_v0 }
 0x119   : > { %2414 = vmatpush3.bf16.xpose.msk.msra.mxu1 %vm2867_vm2, %v2504_v34 }
 0x11a   : > { %2542 = vmatpush3.bf16.xpose.msk.msra.mxu0 %vm2867_vm2, %v2540_v19 }
 0x11b   : > { %2543 = vmatprep.subr.bf16.mxu0 %v2761_v0 }
 0x120   : > { %2110 = vmatmul.mubr.msk.f32.vlgmr.msra.gmra.mrb[0].mxu1 %vm178_vm1, %v1624_v20 }
 0x121   : > { %2250 = vmatmul.mubr.msk.f32.vlgmr.msra.gmra.mrb[0].mxu0 %vm178_vm1, %v1762_v25 }
 0x122   : > { %2546 = vmatpush3.bf16.xpose.msk.msra.mxu0 %vm2867_vm2, %v3023_v61  ;;  %2284 = vmatprep.mubr.msk.f32.mxu0 %vm2762_vm0, %v2763_v1  ;;  %v1794_v1 = vld [vmem:[%s2863_s6 + $0xda] sm:$0xff]  ;;  %s1462_s6 = sshll.u32 %s150_s29, 4  ;;  %s3313_s6 = int_to_ptr.vmem [resolvable:$true] %s1462_s6 }
 0x123   : > { %2547 = vmatprep.subr.bf16.mxu0 %v2761_v0  ;;  %v2572_v31 = vpack.c.bf16 %v1795_v26, %v1794_v1  ;;  %s2665_s13 = scalar_lea.vmem %s3313_s6, 128  ;;  %p2672_p2 = scmp.lt.s32.totalorder %s3313_s6, %s2670_s7 }
 0x124   : > { %p2666_p13 = scmp.ne.s32.totalorder %s3313_s6, %s2665_s13  ;;  %p2673_p4 = scmp.lt.s32.totalorder %s2671_s8, %s2665_s13 }
 0x126   : > { %p2667_p0 = pnand %p2666_p13, %p2831_p3  ;;  %p2674_p5 = por %p2673_p4, %p2672_p2 }
 0x128   : > { %p2668_p1 = pneg %p2667_p0 }
 0x12a   : > { %2550 = vmatpush3.bf16.xpose.msk.msra.mxu0 %vm2867_vm2, %v3035_v3  ;;  %p2675_p6 = pnand %p2674_p5, %p2668_p1 }
 0x12b   : > { %2551 = vmatprep.subr.bf16.mxu0 %v2761_v0 }
 0x132   : > { %2554 = vmatpush3.bf16.xpose.msk.msra.mxu0 %vm2867_vm2, %v3047_v6 }
 0x133   : > { %2555 = vmatprep.subr.bf16.mxu0 %v2761_v0 }
 0x13a   : > { %2558 = vmatpush3.bf16.xpose.msk.msra.mxu0 %vm2867_vm2, %v3059_v9 }
 0x13b   : > { %2559 = vmatprep.subr.bf16.mxu0 %v2761_v0 }
 0x142   : > { %2562 = vmatpush3.bf16.xpose.msk.msra.mxu0 %vm2867_vm2, %v3071_v12 }
 0x143   : > { %2563 = vmatprep.subr.bf16.mxu0 %v2761_v0 }
 0x14a   : > { %2566 = vmatpush3.bf16.xpose.msk.msra.mxu0 %vm2867_vm2, %v3083_v17 }
 0x14b   : > { %2567 = vmatprep.subr.bf16.mxu0 %v2761_v0 }
 0x152   : > { %2570 = vmatpush3.bf16.xpose.msk.msra.mxu0 %vm2867_vm2, %v3095_v22 }
 0x153   : > { %2571 = vmatprep.subr.bf16.mxu0 %v2761_v0 }
 0x15a   : > { %2574 = vmatpush3.bf16.xpose.msk.msra.mxu0 %vm2867_vm2, %v2572_v31 }
 0x161   : > { %2285 = vmatmul.mubr.msk.f32.vlgmr.msra.gmra.mrb[0].mxu0 %vm178_vm1, %v1796_v32 }
 0x1f3   : > { %v725_v37 = vpop.f32.mrb[0].mxu1 }
 0x1f4   : > { %v2111_v38 = vpop.f32.mrb[1].mxu1 }
 0x234   : > { %v1438_v0 = vpop.f32.mrb[0].mxu0 }
 0x235   : > { %v2575_v42 = vadd.f32 %v1438_v0, %v725_v37  ;;  %v2286_v2 = vpop.f32.mrb[1].mxu0 }
 0x237   : > { %1445 = vst [vmem:[%s150_s29] sm:$0xff] %v2575_v42 }
 0x238   : > { %2678 = shalt.err (!%p2675_p6)
}
 0x239   : > { %s2679_s17 = scalar_lea.hbm %s3311_s4, 128  ;;  %s2683_s24 = scalar_lea.hbm %s3366_s2, 512 }
 0x23a   : > { %p2680_p7 = scmp.ne.s32.totalorder %s3311_s4, %s2679_s17  ;;  %p2684_p11 = scmp.lt.u32.totalorder %s3311_s4, %s3366_s2 }
 0x23b   : > { %p2685_p12 = scmp.lt.u32.totalorder %s2683_s24, %s2679_s17  ;;  %p2687_p0 = scmp.lt.u32.totalorder %s2679_s17, %s3311_s4 }
 0x23c   : > { %p2681_p9 = pnand %p2680_p7, %p2831_p3 }
 0x23d   : > { %p2686_p13 = por %p2685_p12, %p2684_p11 }
 0x23e   : > { %p2682_p10 = pneg %p2681_p9 }
 0x23f   : > { %p2688_p1 = por %p2687_p0, %p2686_p13 }
 0x241   : > { %p2689_p2 = pnand %p2688_p1, %p2682_p10 }
 0x243   : > { %2692 = shalt.err (!%p2689_p2)
}
 0x244   : > { %2591 = dma.vmem_to_hbm [thread:$0]  (%p2831_p3), %s3313_s6, 128, %s3311_s4, %s1447_s5  }
 0x245 PF: > { %p2597_p4 = scmp.ge.s32.totalorder %s2759_s16, 2  ;;  %s1474_s28 = sand.u32 1, %s2731_s9  }
 0x246   : > { %s1475_s29 = scalar_lea.sflag [#allocation4], %s1474_s28 }
 0x247   : > { %p2594_p5 = pnand %p2597_p4, %p2840_p8 }
 0x249   : > { %2726 = dma.done.wait (!%p2594_p5), %s1475_s29, 128  }
 0x24a   : > { %2728 = vsyncadd (!%p2594_p5), %s1475_s29, 4294967168  ;;  %s15_s16 = sadd.s32 1, %s2759_s16   ;;  %s3371_s9 = smov %s2735_s10 }
 0x24b   : > { %p12_p6 = scmp.ge.s32.totalorder %s15_s16, 6   ;;  %s3372_s10 = smov %s2739_s11 }
 0x24c   : > { %s3373_s11 = smov %s2849_s27  ;;  %s3374_s12 = smov %s2751_s14 }
 0x24d   : > { %s3375_s13 = smov %s2755_s15  ;;  %s3376_s14 = smov %s3379_s19 }
 0x24e   : > { %s3377_s15 = smov %s3383_s20  ;;  %14 = sbr.rel (!%p12_p6) target bundleno = 5 (0x5), region = 74 }
 0x255   :  { %1480 = vsyncpa [#allocation4], 1 }
 0x256   :  { %1482 = vsyncpa [#allocation4 + $0x1], 1 }

</bundles_post_ra>
